<compile_context>
chip_gen: v5e
topology: v5e:2x2
jax: 0.10.0
libtpu: 0.0.40
codegen_flags: <defaults>
</compile_context>

<pallas_src>
import functools

import jax
import jax.numpy as jnp
from jax.experimental import pallas as pl
from jax.experimental.pallas import tpu as pltpu


def _round_up(x, m):
    return ((x + m - 1) // m) * m


def _make_pooler_kernel(s_true, ts, seq_padded):
    """Kernel closed over the true sequence length / seq tile / padding flag."""

    def kernel(x_ref, wt_ref, b_ref, o_ref, sum_ref, max_ref):
        # x_ref : (TB, TS, Hp)   VMEM, native dtype
        # wt_ref: (2*Hp, Hp)     VMEM, f32 (transposed, padded, mean-half / S)
        # b_ref : (1, Hp)        VMEM, f32
        # o_ref : (TB, Hp)       VMEM
        # sum_ref, max_ref: (TB, Hp) f32 scratch accumulators
        s_idx = pl.program_id(1)
        n_s = pl.num_programs(1)

        @pl.when(s_idx == 0)
        def _init():
            sum_ref[...] = jnp.zeros(sum_ref.shape, jnp.float32)
            max_ref[...] = jnp.full(max_ref.shape, -jnp.inf, jnp.float32)

        x = x_ref[...]                                    # (TB, TS, Hp)

        # Sum: padded sequence rows are zeros in HBM -> no masking needed.
        sum_ref[...] += jnp.sum(x.astype(jnp.float32), axis=1)

        # Max: mask padded sequence rows (beyond true S) to -inf.  Only
        # compiled in when sequence padding actually exists.
        if seq_padded:
            seq_pos = s_idx * ts + jax.lax.broadcasted_iota(
                jnp.int32, (1, ts, 1), 1)
            x = jnp.where(seq_pos < s_true, x,
                          jnp.asarray(-jnp.inf, dtype=x.dtype))
        max_ref[...] = jnp.maximum(
            max_ref[...], jnp.max(x, axis=1).astype(jnp.float32))

        @pl.when(s_idx == n_s - 1)
        def _finalize():
            hp = wt_ref.shape[1]
            # concat([mean, max]) @ Wt == sum @ (Wt[:Hp] / S) + max @ Wt[Hp:]
            # (1/S already folded into the mean-half rows of wt).
            out = jnp.dot(sum_ref[...], wt_ref[0:hp, :],
                          preferred_element_type=jnp.float32)
            out = out + jnp.dot(max_ref[...], wt_ref[hp:2 * hp, :],
                                preferred_element_type=jnp.float32)
            out = out + b_ref[...]                        # broadcast (1, Hp)
            o_ref[...] = out.astype(o_ref.dtype)

    return kernel


@functools.partial(jax.jit, static_argnames=("tb", "block_bytes"))
def pooler_forward(x, w, b, *, tb=8, block_bytes=4 * 1024 * 1024):
    """Pooler forward.

    x: (B, S, H)  activations
    w: (H, 2H)    nn.Linear(2H, H) weight
    b: (H,)       nn.Linear bias
    returns (B, H) in x.dtype
    """
    B, S, H = x.shape
    itemsize = jnp.dtype(x.dtype).itemsize

    # Lane-dense hidden dim, sublane-friendly batch tile.
    Hp = _round_up(H, 128)
    TB = tb
    Bp = _round_up(B, TB)

    # Sequence tile: target ~block_bytes per streamed block (bigger tiles ->
    # closer to HBM roofline), sublane multiple, capped by the padded S.
    ts = block_bytes // (TB * Hp * itemsize)
    ts = max(8, (ts // 8) * 8)
    TS = min(ts, 1024, _round_up(S, 8))
    Sp = _round_up(S, TS)
    seq_padded = Sp != S

    # Pad activations with zeros (zeros are neutral for the sum; padded seq
    # rows are masked to -inf for the max inside the kernel; padded batch rows
    # and hidden columns are sliced off / hit zero weight rows).
    x_p = x
    if (Bp, Sp, Hp) != (B, S, H):
        x_p = jnp.pad(x, ((0, Bp - B), (0, Sp - S), (0, Hp - H)))

    # Transposed + padded weight, (2*Hp, Hp):
    #   rows [0:Hp)      = mean half, pre-scaled by 1/S (so kernel uses sum),
    #   rows [Hp:2*Hp)   = max half,
    #   all padded rows / columns zero.
    wt = w.T.astype(jnp.float32)                          # (2H, H)
    pad_hw = ((0, Hp - H), (0, Hp - H))
    w_mean = jnp.pad(wt[:H] * jnp.float32(1.0 / S), pad_hw)   # (Hp, Hp)
    w_max = jnp.pad(wt[H:], pad_hw)                            # (Hp, Hp)
    wt_p = jnp.concatenate([w_mean, w_max], axis=0)            # (2Hp, Hp)

    b_p = jnp.pad(b.astype(jnp.float32), (0, Hp - H)).reshape(1, Hp)

    grid = (Bp // TB, Sp // TS)

    out_p = pl.pallas_call(
        _make_pooler_kernel(S, TS, seq_padded),
        out_shape=jax.ShapeDtypeStruct((Bp, Hp), x.dtype),
        grid=grid,
        in_specs=[
            pl.BlockSpec((TB, TS, Hp), lambda bi, si: (bi, si, 0)),
            pl.BlockSpec((2 * Hp, Hp), lambda bi, si: (0, 0)),
            pl.BlockSpec((1, Hp), lambda bi, si: (0, 0)),
        ],
        out_specs=pl.BlockSpec((TB, Hp), lambda bi, si: (bi, 0)),
        scratch_shapes=[
            pltpu.VMEM((TB, Hp), jnp.float32),   # running sum
            pltpu.VMEM((TB, Hp), jnp.float32),   # running max
        ],
        compiler_params=pltpu.CompilerParams(
            dimension_semantics=("parallel", "arbitrary"),
            vmem_limit_bytes=64 * 1024 * 1024,
        ),
    )(x_p, wt_p, b_p)

    return out_p[:B, :H]


def pooler_reference(x, w, b):
    mean = jnp.mean(x, axis=1)
    mx = jnp.max(x, axis=1)
    conc = jnp.concatenate([mean, mx], axis=-1)
    return conc @ w.T + b


if __name__ == "__main__":
    B, S, H = 2, 8, 32

    key = jax.random.PRNGKey(0)
    kx, kw, kb = jax.random.split(key, 3)

    x = jax.random.normal(kx, (B, S, H), dtype=jnp.float32)
    # Deterministic init mimicking nn.Linear(2H, H): uniform(-1/sqrt(2H), 1/sqrt(2H))
    bound = 1.0 / jnp.sqrt(2.0 * H)
    w = jax.random.uniform(kw, (H, 2 * H), minval=-bound, maxval=bound,
                           dtype=jnp.float32)
    b = jax.random.uniform(kb, (H,), minval=-bound, maxval=bound,
                           dtype=jnp.float32)

    out = pooler_forward(x, w, b)
    out = jax.block_until_ready(out)

    ref = pooler_reference(x, w, b)
    assert out.shape == (B, H)
    assert jnp.allclose(out, ref, atol=1e-5, rtol=1e-5), "mismatch vs reference"

    print("KERNEL_OK")
</pallas_src>

<mosaic_0001>
module attributes {stable_mosaic.version = 11 : i64} {
  func.func @kernel(%arg0: i32, %arg1: i32, %arg2: memref<8x8x128xf32, #tpu.memory_space<vmem>>, %arg3: memref<256x128xf32, #tpu.memory_space<vmem>>, %arg4: memref<1x128xf32, #tpu.memory_space<vmem>>, %arg5: memref<8x128xf32, #tpu.memory_space<vmem>>, %arg6: memref<8x128xf32, #tpu.memory_space<vmem>>, %arg7: memref<8x128xf32, #tpu.memory_space<vmem>>) attributes {dimension_semantics = [#tpu.dimension_semantics<parallel>, #tpu.dimension_semantics<arbitrary>], iteration_bounds = array<i64: 1, 1>, scalar_prefetch = 0 : i64, scratch_operands = 2 : i64, tpu.core_type = #tpu.core_type<tc>, window_params = [{transform_indices = @transform_0, window_bounds = array<i64: 8, 8, 128>}, {pipeline_mode = #tpu.pipeline_mode<synchronous>, transform_indices = @transform_1, window_bounds = array<i64: 256, 128>}, {pipeline_mode = #tpu.pipeline_mode<synchronous>, transform_indices = @transform_2, window_bounds = array<i64: 1, 128>}, {transform_indices = @transform_3, window_bounds = array<i64: 8, 128>}]} {
    %c0_i32 = arith.constant 0 : i32
    %0 = arith.cmpi eq, %arg1, %c0_i32 : i32
    %1 = arith.extui %0 : i1 to i32
    %c0_i32_0 = arith.constant 0 : i32
    %2 = arith.cmpi ne, %1, %c0_i32_0 : i32
    scf.if %2 {
      %cst_14 = arith.constant 0.000000e+00 : f32
      %15 = vector.broadcast %cst_14 : f32 to vector<8x128xf32>
      %c0_15 = arith.constant 0 : index
      %c0_16 = arith.constant 0 : index
      %16 = vector.load %arg6[%c0_15, %c0_16] : memref<8x128xf32, #tpu.memory_space<vmem>>, vector<8x128xf32>
      tpu.vector_store %arg6[%c0_15, %c0_16], %15 {strides = array<i32>} : memref<8x128xf32, #tpu.memory_space<vmem>>, vector<8x128xf32>,
      %cst_17 = arith.constant 0xFF800000 : f32
      %17 = vector.broadcast %cst_17 : f32 to vector<8x128xf32>
      %c0_18 = arith.constant 0 : index
      %c0_19 = arith.constant 0 : index
      %18 = vector.load %arg7[%c0_18, %c0_19] : memref<8x128xf32, #tpu.memory_space<vmem>>, vector<8x128xf32>
      tpu.vector_store %arg7[%c0_18, %c0_19], %17 {strides = array<i32>} : memref<8x128xf32, #tpu.memory_space<vmem>>, vector<8x128xf32>,
    } else {
    }
    %c0 = arith.constant 0 : index
    %c0_1 = arith.constant 0 : index
    %c0_2 = arith.constant 0 : index
    %3 = vector.load %arg2[%c0, %c0_1, %c0_2] : memref<8x8x128xf32, #tpu.memory_space<vmem>>, vector<8x8x128xf32>
    %c0_3 = arith.constant 0 : index
    %c0_4 = arith.constant 0 : index
    %4 = vector.load %arg6[%c0_3, %c0_4] : memref<8x128xf32, #tpu.memory_space<vmem>>, vector<8x128xf32>
    %cst = arith.constant dense<0.000000e+00> : vector<8x128xf32>
    %5 = vector.multi_reduction <add>, %3, %cst [1] : vector<8x8x128xf32> to vector<8x128xf32>
    %6 = arith.addf %4, %5 : vector<8x128xf32>
    %c0_5 = arith.constant 0 : index
    %c0_6 = arith.constant 0 : index
    %7 = vector.load %arg6[%c0_5, %c0_6] : memref<8x128xf32, #tpu.memory_space<vmem>>, vector<8x128xf32>
    tpu.vector_store %arg6[%c0_5, %c0_6], %6 {strides = array<i32>} : memref<8x128xf32, #tpu.memory_space<vmem>>, vector<8x128xf32>,
    %c0_7 = arith.constant 0 : index
    %c0_8 = arith.constant 0 : index
    %8 = vector.load %arg7[%c0_7, %c0_8] : memref<8x128xf32, #tpu.memory_space<vmem>>, vector<8x128xf32>
    %cst_9 = arith.constant dense<0xFF800000> : vector<8x128xf32>
    %9 = vector.multi_reduction <maximumf>, %3, %cst_9 [1] : vector<8x8x128xf32> to vector<8x128xf32>
    %10 = arith.maximumf %8, %9 : vector<8x128xf32>
    %c0_10 = arith.constant 0 : index
    %c0_11 = arith.constant 0 : index
    %11 = vector.load %arg7[%c0_10, %c0_11] : memref<8x128xf32, #tpu.memory_space<vmem>>, vector<8x128xf32>
    tpu.vector_store %arg7[%c0_10, %c0_11], %10 {strides = array<i32>} : memref<8x128xf32, #tpu.memory_space<vmem>>, vector<8x128xf32>,
    %c0_i32_12 = arith.constant 0 : i32
    %12 = arith.cmpi eq, %arg1, %c0_i32_12 : i32
    %13 = arith.extui %12 : i1 to i32
    %c0_i32_13 = arith.constant 0 : i32
    %14 = arith.cmpi ne, %13, %c0_i32_13 : i32
    scf.if %14 {
      %c0_14 = arith.constant 0 : index
      %c0_15 = arith.constant 0 : index
      %15 = vector.load %arg6[%c0_14, %c0_15] : memref<8x128xf32, #tpu.memory_space<vmem>>, vector<8x128xf32>
      %c0_16 = arith.constant 0 : index
      %c0_17 = arith.constant 0 : index
      %16 = vector.load %arg3[%c0_16, %c0_17] : memref<256x128xf32, #tpu.memory_space<vmem>>, vector<128x128xf32>
      %cst_18 = arith.constant dense<0.000000e+00> : vector<8x128xf32>
      %17 = tpu.matmul %15, %16, %cst_18 {dimension_numbers = #tpu.dot_dimension_numbers<[1], [0], [0], [1], [0, 0, 1, 1], [], []>} : vector<8x128xf32>, vector<128x128xf32>, vector<8x128xf32> -> vector<8x128xf32>
      %c0_19 = arith.constant 0 : index
      %c0_20 = arith.constant 0 : index
      %18 = vector.load %arg7[%c0_19, %c0_20] : memref<8x128xf32, #tpu.memory_space<vmem>>, vector<8x128xf32>
      %c128 = arith.constant 128 : index
      %c0_21 = arith.constant 0 : index
      %19 = vector.load %arg3[%c128, %c0_21] : memref<256x128xf32, #tpu.memory_space<vmem>>, vector<128x128xf32>
      %cst_22 = arith.constant dense<0.000000e+00> : vector<8x128xf32>
      %20 = tpu.matmul %18, %19, %cst_22 {dimension_numbers = #tpu.dot_dimension_numbers<[1], [0], [0], [1], [0, 0, 1, 1], [], []>} : vector<8x128xf32>, vector<128x128xf32>, vector<8x128xf32> -> vector<8x128xf32>
      %21 = arith.addf %17, %20 : vector<8x128xf32>
      %c0_23 = arith.constant 0 : index
      %c0_24 = arith.constant 0 : index
      %22 = vector.load %arg4[%c0_23, %c0_24] : memref<1x128xf32, #tpu.memory_space<vmem>>, vector<1x128xf32>
      %23 = vector.broadcast %22 : vector<1x128xf32> to vector<8x128xf32>
      %24 = arith.addf %21, %23 : vector<8x128xf32>
      %c0_25 = arith.constant 0 : index
      %c0_26 = arith.constant 0 : index
      %25 = vector.load %arg5[%c0_25, %c0_26] : memref<8x128xf32, #tpu.memory_space<vmem>>, vector<8x128xf32>
      tpu.vector_store %arg5[%c0_25, %c0_26], %24 {strides = array<i32>} : memref<8x128xf32, #tpu.memory_space<vmem>>, vector<8x128xf32>,
    } else {
    }
    return
  }
  func.func @transform_0(%arg0: i32, %arg1: i32) -> (i32, i32, i32) {
    %c0_i32 = arith.constant 0 : i32
    %c0_i32_0 = arith.constant 0 : i32
    return %arg0, %arg1, %c0_i32 : i32, i32, i32
  }
  func.func @transform_1(%arg0: i32, %arg1: i32) -> (i32, i32) {
    %c0_i32 = arith.constant 0 : i32
    %c0_i32_0 = arith.constant 0 : i32
    %c0_i32_1 = arith.constant 0 : i32
    return %c0_i32, %c0_i32_0 : i32, i32
  }
  func.func @transform_2(%arg0: i32, %arg1: i32) -> (i32, i32) {
    %c0_i32 = arith.constant 0 : i32
    %c0_i32_0 = arith.constant 0 : i32
    %c0_i32_1 = arith.constant 0 : i32
    return %c0_i32, %c0_i32_0 : i32, i32
  }
  func.func @transform_3(%arg0: i32, %arg1: i32) -> (i32, i32) {
    %c0_i32 = arith.constant 0 : i32
    %c0_i32_0 = arith.constant 0 : i32
    return %arg0, %c0_i32 : i32, i32
  }
}

</mosaic_0001>

<bundles_post_ra>
// kernel: pooler_forward.1
= control target key start
LH: loop header
LB: loop body
LE: loop exit
PB: predicated region body
PF: predicated region fallthrough
CT: control target
= control target key end

     0   :  { %vm85_vm0 = vcmask 1041409   ;;  %vm87_vm1 = vcmask 1042434   ;;  %vm89_vm2 = vcmask 1043459   ;;  %vm91_vm3 = vcmask 1044484   ;;  %s489_s1 = inlined_call_operand.vmem [shape: f32[256,128], index: 1, kind: input, shape index: {}]   ;;  %s490_s0 = inlined_call_operand.vmem [shape: f32[8,8,128], index: 0, kind: input, shape index: {}]   ;;  %s491_s2 = inlined_call_operand.vmem [shape: f32[1,128], index: 2, kind: input, shape index: {}]   ;;  %s492_s3 = inlined_call_operand.vmem [shape: f32[8,128], index: 3, kind: output, shape index: {}]  }
   0x1   :  { %v205_v0 = vld [vmem:[%s489_s1 + $0xf8] sm:$0xff]  ;;  %v204_v2 = vld [vmem:[%s489_s1 + $0xf0] sm:$0xff]  ;;  %v203_v4 = vld [vmem:[%s489_s1 + $0xe8] sm:$0xff]  ;;  %vm93_vm4 = vcmask 1045509   ;;  %vm95_vm5 = vcmask 1046534   ;;  %vm97_vm6 = vcmask 1047559  }
   0x2   :  { %v188_v1 = vld [vmem:[%s489_s1 + $0x78] sm:$0xff]  ;;  %206 = vmatpush.msra.mxu0 %v205_v0  ;;  %v187_v3 = vld [vmem:[%s489_s1 + $0x70] sm:$0xff]  ;;  %v186_v5 = vld [vmem:[%s489_s1 + $0x68] sm:$0xff] }
   0x3   :  { %226 = vmatpush.msra.mxu1 %v188_v1  ;;  %v202_v6 = vld [vmem:[%s489_s1 + $0xe0] sm:$0xff]  ;;  %v201_v8 = vld [vmem:[%s489_s1 + $0xd8] sm:$0xff]  ;;  %v200_v10 = vld [vmem:[%s489_s1 + $0xd0] sm:$0xff] }
   0x4   :  { %207 = vmatpush.msra.mxu0 %v204_v2  ;;  %v185_v7 = vld [vmem:[%s489_s1 + $0x60] sm:$0xff]  ;;  %v184_v9 = vld [vmem:[%s489_s1 + $0x58] sm:$0xff]  ;;  %v183_v11 = vld [vmem:[%s489_s1 + $0x50] sm:$0xff] }
   0x5   :  { %227 = vmatpush.msra.mxu1 %v187_v3  ;;  %v199_v12 = vld [vmem:[%s489_s1 + $0xc8] sm:$0xff]  ;;  %v198_v14 = vld [vmem:[%s489_s1 + $0xc0] sm:$0xff]  ;;  %v338_v18 = vld [vmem:[%s490_s0 + $0x10] sm:$0xff] }
   0x6   :  { %208 = vmatpush.msra.mxu0 %v203_v4  ;;  %v182_v13 = vld [vmem:[%s489_s1 + $0x48] sm:$0xff]  ;;  %v181_v15 = vld [vmem:[%s489_s1 + $0x40] sm:$0xff]  ;;  %v343_v19 = vld [vmem:[%s490_s0 + $0x18] sm:$0xff]  ;;  %v41_v25 = vrot.slane %v338_v18, 4 }
   0x7   :  { %228 = vmatpush.msra.mxu1 %v186_v5  ;;  %v328_v16 = vld [vmem:[%s490_s0] sm:$0xff]  ;;  %v333_v17 = vld [vmem:[%s490_s0 + $0x8] sm:$0xff]  ;;  %v359_v23 = vld [vmem:[%s490_s0 + $0x30] sm:$0xff]  ;;  %v47_v26 = vrot.slane %v343_v19, 4 }
   0x8   :  { %209 = vmatpush.msra.mxu0 %v202_v6  ;;  %v29_v20 = vrot.slane %v328_v16, 4  ;;  %v349_v21 = vld [vmem:[%s490_s0 + $0x20] sm:$0xff]  ;;  %v354_v22 = vld [vmem:[%s490_s0 + $0x28] sm:$0xff]  ;;  %v35_v24 = vrot.slane %v333_v17, 4  ;;  %v367_v27 = vld [vmem:[%s490_s0 + $0x38] sm:$0xff]  ;;  %v65_v30 = vrot.slane %v359_v23, 4  ;;  %v116_v36 = vmax.f32 %v338_v18, %v41_v25 }
   0x9   :  { %229 = vmatpush.msra.mxu1 %v185_v7  ;;  %v53_v28 = vrot.slane %v349_v21, 4  ;;  %v59_v29 = vrot.slane %v354_v22, 4  ;;  %v197_v32 = vld [vmem:[%s489_s1 + $0xb8] sm:$0xff]  ;;  %v71_v34 = vrot.slane %v367_v27, 4  ;;  %v122_v37 = vmax.f32 %v343_v19, %v47_v26  ;;  %v196_v42 = vld [vmem:[%s489_s1 + $0xb0] sm:$0xff]  ;;  %v195_v52 = vld [vmem:[%s489_s1 + $0xa8] sm:$0xff] }
   0xa   :  { %210 = vmatpush.msra.mxu0 %v201_v8  ;;  %v104_v31 = vmax.f32 %v328_v16, %v29_v20  ;;  %v180_v33 = vld [vmem:[%s489_s1 + $0x38] sm:$0xff]  ;;  %v110_v35 = vmax.f32 %v333_v17, %v35_v24  ;;  %v140_v41 = vmax.f32 %v359_v23, %v65_v30  ;;  %v179_v43 = vld [vmem:[%s489_s1 + $0x30] sm:$0xff]  ;;  %v117_v45 = vrot.slane %v116_v36, 2  ;;  %v178_v53 = vld [vmem:[%s489_s1 + $0x28] sm:$0xff] }
   0xb   :  { %230 = vmatpush.msra.mxu1 %v184_v9  ;;  %v128_v39 = vmax.f32 %v349_v21, %v53_v28  ;;  %v134_v40 = vmax.f32 %v354_v22, %v59_v29  ;;  %v123_v46 = vrot.slane %v122_v37, 2  ;;  %v146_v47 = vmax.f32 %v367_v27, %v71_v34  ;;  %v194_v62 = vld [vmem:[%s489_s1 + $0xa0] sm:$0xff]  ;;  %v193_v8 = vld [vmem:[%s489_s1 + $0x98] sm:$0xff] }
   0xc   :  { %211 = vmatpush.msra.mxu0 %v200_v10  ;;  %v105_v38 = vrot.slane %v104_v31, 2  ;;  %v111_v44 = vrot.slane %v110_v35, 2  ;;  %v141_v51 = vrot.slane %v140_v41, 2  ;;  %v118_v55 = vmax.f32 %v116_v36, %v117_v45  ;;  %v177_v63 = vld [vmem:[%s489_s1 + $0x20] sm:$0xff]  ;;  %v176_v9 = vld [vmem:[%s489_s1 + $0x18] sm:$0xff] }
   0xd   :  { %231 = vmatpush.msra.mxu1 %v183_v11  ;;  %v129_v49 = vrot.slane %v128_v39, 2  ;;  %v135_v50 = vrot.slane %v134_v40, 2  ;;  %v124_v56 = vmax.f32 %v122_v37, %v123_v46  ;;  %v147_v57 = vrot.slane %v146_v47, 2  ;;  %v173_v45 = vld [vmem:[%s489_s1] sm:$0xff] }
   0xe   :  { %212 = vmatpush.msra.mxu0 %v199_v12  ;;  %v106_v48 = vmax.f32 %v104_v31, %v105_v38  ;;  %v112_v54 = vmax.f32 %v110_v35, %v111_v44  ;;  %v142_v61 = vmax.f32 %v140_v41, %v141_v51  ;;  %v119_v1 = vrot.slane %v118_v55, 1  ;;  %v190_v44 = vld [vmem:[%s489_s1 + $0x80] sm:$0xff] }
   0xf   :  { %232 = vmatpush.msra.mxu1 %v182_v13  ;;  %v130_v59 = vmax.f32 %v128_v39, %v129_v49  ;;  %v136_v60 = vmax.f32 %v134_v40, %v135_v50  ;;  %v125_v2 = vrot.slane %v124_v56, 1  ;;  %v148_v3 = vmax.f32 %v146_v47, %v147_v57 }
  0x10   :  { %213 = vmatpush.msra.mxu0 %v198_v14  ;;  %v107_v58 = vrot.slane %v106_v48, 1  ;;  %v113_v0 = vrot.slane %v112_v54, 1  ;;  %v143_v7 = vrot.slane %v142_v61, 1  ;;  %v120_v11 = vmax.f32 %v118_v55, %v119_v1 }
  0x11   :  { %233 = vmatpush.msra.mxu1 %v181_v15  ;;  %v131_v5 = vrot.slane %v130_v59, 1  ;;  %v137_v6 = vrot.slane %v136_v60, 1  ;;  %v126_v12 = vmax.f32 %v124_v56, %v125_v2  ;;  %v149_v13 = vrot.slane %v148_v3, 1 }
  0x12   :  { %214 = vmatpush.msra.mxu0 %v197_v32  ;;  %v108_v4 = vmax.f32 %v106_v48, %v107_v58  ;;  %v114_v10 = vmax.f32 %v112_v54, %v113_v0  ;;  %v144_v31 = vmax.f32 %v142_v61, %v143_v7  ;;  %v192_v32 = vld [vmem:[%s489_s1 + $0x90] sm:$0xff]  ;;  %v30_v37 = vadd.f32 %v29_v20, %v328_v16  ;;  %v191_v16 = vld [vmem:[%s489_s1 + $0x88] sm:$0xff] }
  0x13   :  { %234 = vmatpush.msra.mxu1 %v180_v33  ;;  %v132_v14 = vmax.f32 %v130_v59, %v131_v5  ;;  %v138_v15 = vmax.f32 %v136_v60, %v137_v6  ;;  %v175_v33 = vld [vmem:[%s489_s1 + $0x10] sm:$0xff]  ;;  %v150_v35 = vmax.f32 %v148_v3, %v149_v13  ;;  %v36_v38 = vadd.f32 %v35_v24, %v333_v17  ;;  %v174_v17 = vld [vmem:[%s489_s1 + $0x8] sm:$0xff] }
  0x14   :  { %215 = vmatpush.msra.mxu0 %v196_v42  ;;  %v159_v36 = vsel %vm85_vm0, %v114_v10, %v108_v4  ;;  %v42_v40 = vadd.f32 %v41_v25, %v338_v18  ;;  %v48_v41 = vadd.f32 %v47_v26, %v343_v19  ;;  %v31_v24 = vrot.slane %v30_v37, 2 }
  0x15   :  { %235 = vmatpush.msra.mxu1 %v179_v43  ;;  %v160_v39 = vsel %vm87_vm1, %v120_v11, %v159_v36  ;;  %v37_v42 = vrot.slane %v36_v38, 2  ;;  %v54_v18 = vadd.f32 %v53_v28, %v349_v21  ;;  %v60_v43 = vadd.f32 %v59_v29, %v354_v22 }
  0x16   :  { %216 = vmatpush.msra.mxu0 %v195_v52  ;;  %v161_v20 = vsel %vm89_vm2, %v126_v12, %v160_v39  ;;  %v43_v25 = vrot.slane %v42_v40, 2  ;;  %v49_v26 = vrot.slane %v48_v41, 2  ;;  %v32_v28 = vadd.f32 %v31_v24, %v30_v37 }
  0x17   :  { %236 = vmatpush.msra.mxu1 %v178_v53  ;;  %v162_v19 = vsel %vm91_vm3, %v132_v14, %v161_v20  ;;  %v38_v46 = vadd.f32 %v37_v42, %v36_v38  ;;  %v55_v47 = vrot.slane %v54_v18, 2  ;;  %v61_v22 = vrot.slane %v60_v43, 2 }
  0x18   :  { %217 = vmatpush.msra.mxu0 %v194_v62  ;;  %v163_v21 = vsel %vm93_vm4, %v138_v15, %v162_v19  ;;  %v44_v49 = vadd.f32 %v43_v25, %v42_v40  ;;  %v50_v50 = vadd.f32 %v49_v26, %v48_v41  ;;  %v33_v51 = vrot.slane %v32_v28, 1  ;;  %v256_v15 = vld [vmem:[%s491_s2] ss:$0 sm:$0xff] }
  0x19   :  { %237 = vmatpush.msra.mxu1 %v177_v63  ;;  %v164_v48 = vsel %vm95_vm5, %v144_v31, %v163_v21  ;;  %v39_v52 = vrot.slane %v38_v46, 1  ;;  %v56_v53 = vadd.f32 %v55_v47, %v54_v18  ;;  %v62_v56 = vadd.f32 %v61_v22, %v60_v43 }
  0x1a   :  { %218 = vmatpush.msra.mxu0 %v193_v8  ;;  %v165_v29 = vsel %vm97_vm6, %v150_v35, %v164_v48  ;;  %v45_v54 = vrot.slane %v44_v49, 1  ;;  %v51_v55 = vrot.slane %v50_v50, 1  ;;  %v66_v57 = vadd.f32 %v65_v30, %v359_v23 }
  0x1b   :  { %238 = vmatpush.msra.mxu1 %v176_v9  ;;  %v34_v58 = vadd.f32 %v33_v51, %v32_v28  ;;  %v40_v59 = vadd.f32 %v39_v52, %v38_v46  ;;  %v57_v60 = vrot.slane %v56_v53, 1  ;;  %v72_v61 = vadd.f32 %v71_v34, %v367_v27 }
  0x1c   :  { %219 = vmatpush.msra.mxu0 %v192_v32  ;;  %v46_v62 = vadd.f32 %v45_v54, %v44_v49  ;;  %v52_v63 = vadd.f32 %v51_v55, %v50_v50  ;;  %v63_v0 = vrot.slane %v62_v56, 1  ;;  %v67_v1 = vrot.slane %v66_v57, 2 }
  0x1d   :  { %239 = vmatpush.msra.mxu1 %v175_v33  ;;  %v58_v2 = vadd.f32 %v57_v60, %v56_v53  ;;  %v73_v3 = vrot.slane %v72_v61, 2  ;;  %v86_v4 = vsel %vm85_vm0, %v40_v59, %v34_v58 }
  0x1e   :  { %220 = vmatpush.msra.mxu0 %v191_v16  ;;  %v64_v5 = vadd.f32 %v63_v0, %v62_v56  ;;  %v68_v6 = vadd.f32 %v67_v1, %v66_v57  ;;  %v88_v23 = vsel %vm87_vm1, %v46_v62, %v86_v4 }
  0x1f   :  { %240 = vmatpush.msra.mxu1 %v174_v17  ;;  %v74_v30 = vadd.f32 %v73_v3, %v72_v61  ;;  %v90_v7 = vsel %vm89_vm2, %v52_v63, %v88_v23 }
  0x20   :  { %221 = vmatpush.msra.mxu0 %v190_v44  ;;  %v69_v8 = vrot.slane %v68_v6, 1  ;;  %v92_v9 = vsel %vm91_vm3, %v58_v2, %v90_v7 }
  0x21   :  { %241 = vmatpush.msra.mxu1 %v173_v45  ;;  %222 = vmatmul.f32.vlgmr.msra.gmra.mxu0 %v165_v29  ;;  %v75_v10 = vrot.slane %v74_v30, 1  ;;  %v94_v27 = vsel %vm93_vm4, %v64_v5, %v92_v9 }
  0x22   :  { %v70_v34 = vadd.f32 %v69_v8, %v68_v6 }
  0x23   :  { %v76_v11 = vadd.f32 %v75_v10, %v74_v30 }
  0x24   :  { %v96_v12 = vsel %vm95_vm5, %v70_v34, %v94_v27 }
  0x25   :  { %v98_v13 = vsel %vm97_vm6, %v76_v11, %v96_v12 }
  0x26   :  { %242 = vmatmul.f32.vlgmr.msra.gmra.mxu1 %v98_v13 }
  0x9e   :  { %v223_v14 = vpop.f32.mrf.mxu0 }
  0xa3   :  { %v243_v31 = vpop.f32.mrf.mxu1 }
  0xa4   :  { %v244_v32 = vadd.f32 %v243_v31, %v223_v14 }
  0xa6   :  { %v250_v33 = vadd.f32 %v256_v15, %v244_v32 }
  0xa8   :  { %251 = vst [vmem:[%s492_s3] sm:$0xff] %v250_v33 }

</bundles_post_ra>
